<compile_context>
chip_gen: v7x
topology: tpu7x:2x2x1
jax: 0.10.0
libtpu: 0.0.40
codegen_flags: <defaults>
</compile_context>

<pallas_src>
import math
import jax
import jax.numpy as jnp
from jax.experimental import pallas as pl
from jax.experimental.pallas import tpu as pltpu

LANE = 128
SUBLANE = 8


def _ceil_to(n, m):
    return ((n + m - 1) // m) * m


def _slab_layout(D, H, O):
    """Row offsets (sublane-aligned) of each fused group in the param slab.

    The slab is a single (rows, cols) f32 block with cols = one lane-aligned
    width shared by all groups; groups are stacked vertically.
    """
    H2, H4, HD = 2 * H, 4 * H, 2 * O + H
    r = 0
    r_w1 = r; r += _ceil_to(D, SUBLANE)      # l1 weight (LN-folded)  (D , H2)
    r_w2 = r; r += _ceil_to(H2, SUBLANE)     # l2 weight              (H2, H )
    r_wl = r; r += _ceil_to(H2, SUBLANE)     # lstm [Wih;Whh]         (2H, 4H)
    r_wh = r; r += _ceil_to(H, SUBLANE)      # [Wm|Ws|Wc1]            (H , 2O+H)
    r_wc = r; r += _ceil_to(H, SUBLANE)      # cri_output weight      (H , 1 )
    r_b = r;  r += SUBLANE                   # 5 bias rows (padded to 8)
    rows = _ceil_to(r, SUBLANE)
    cols = _ceil_to(max(H2, H, H4, HD, 1), LANE)
    out_w = _ceil_to(2 * O + 1 + 2 * H, LANE)  # [mean|sigma|critic|hx|cx|pad]
    return dict(r_w1=r_w1, r_w2=r_w2, r_wl=r_wl, r_wh=r_wh, r_wc=r_wc,
                r_b=r_b, rows=rows, cols=cols, out_w=out_w)


# ----------------------------- Pallas kernel --------------------------------
def _make_kernel(D, H, O, L):
    H2 = 2 * H
    f32 = jnp.float32

    def kernel(x_ref, hx_ref, cx_ref, p_ref, out_ref):
        def lrelu(z):  # F.leaky_relu(z, 0.25)
            return jnp.where(z >= 0, z, 0.25 * z)

        x = x_ref[...]
        hx = hx_ref[...]
        cx = cx_ref[...]

        # ---- carve the single parameter slab (static, sublane-aligned rows) ----
        W1 = p_ref[L["r_w1"]:L["r_w1"] + D,     0:H2]
        W2 = p_ref[L["r_w2"]:L["r_w2"] + H2,    0:H]
        WL = p_ref[L["r_wl"]:L["r_wl"] + 2 * H, 0:4 * H]
        WH = p_ref[L["r_wh"]:L["r_wh"] + H,     0:2 * O + H]
        WC = p_ref[L["r_wc"]:L["r_wc"] + H,     0:1]
        rb = L["r_b"]
        b1 = p_ref[rb + 0:rb + 1, 0:H2]            # LN-beta folded in
        b2 = p_ref[rb + 1:rb + 2, 0:H]
        bl = p_ref[rb + 2:rb + 3, 0:4 * H]         # bih + bhh (folded)
        bh = p_ref[rb + 3:rb + 4, 0:2 * O + H]     # [bm | bs | bc1]
        bco = p_ref[rb + 4:rb + 5, 0:1]

        # ---- LayerNorm (affine folded into W1/b1 at pack time; eps=1e-5) ----
        mu = jnp.mean(x, axis=-1, keepdims=True)
        var = jnp.mean((x - mu) ** 2, axis=-1, keepdims=True)
        xn = (x - mu) * jax.lax.rsqrt(var + 1e-5)

        # ---- l1 / l2 with leaky relu ----
        h1 = lrelu(jnp.dot(xn, W1, preferred_element_type=f32) + b1)
        h2 = lrelu(jnp.dot(h1, W2, preferred_element_type=f32) + b2)

        # ---- LSTMCell, fused input+recurrent matmul, gate order (i, f, g, o) ----
        hh = jnp.concatenate([h2, hx], axis=-1)                       # (B, 2H)
        gates = jnp.dot(hh, WL, preferred_element_type=f32) + bl      # (B, 4H)
        sig = jax.nn.sigmoid(gates)   # full-vreg EUP ops, then cheap slices
        tnh = jnp.tanh(gates)
        i_g = sig[:, 0 * H:1 * H]
        f_g = sig[:, 1 * H:2 * H]
        g_g = tnh[:, 2 * H:3 * H]
        o_g = sig[:, 3 * H:4 * H]
        c_new = f_g * cx + i_g * g_g
        h_new = o_g * jnp.tanh(c_new)

        # ---- fused heads: [act_mean | act_sigma | cri_l1] in one matmul ----
        heads = jnp.dot(h_new, WH, preferred_element_type=f32) + bh   # (B, 2O+H)
        mean = 2.0 * jnp.tanh(heads[:, 0:O])
        sigma = jax.nn.softplus(heads[:, O:2 * O]) + 0.001
        c1 = lrelu(heads[:, 2 * O:2 * O + H])
        critic = jnp.dot(c1, WC, preferred_element_type=f32) + bco

        # ---- single lane-dense output slab: [mean|sigma|critic|hx|cx|pad] ----
        used = 2 * O + 1 + 2 * H
        pieces = [mean, sigma, critic, h_new, c_new]
        if L["out_w"] > used:
            pieces.append(jnp.zeros((x.shape[0], L["out_w"] - used), f32))
        out_ref[...] = jnp.concatenate(pieces, axis=-1)

    return kernel


# ------------------------------- wrapper -------------------------------------
def actor_critic_forward(x, hx, cx, p_slab, D, H, O):
    B = x.shape[0]
    L = _slab_layout(D, H, O)
    kernel = _make_kernel(D, H, O, L)
    vmem = pl.BlockSpec(memory_space=pltpu.MemorySpace.VMEM)

    out_slab = pl.pallas_call(
        kernel,
        out_shape=jax.ShapeDtypeStruct((B, L["out_w"]), jnp.float32),
        in_specs=[vmem, vmem, vmem, vmem],
        out_specs=vmem,
    )(x, hx, cx, p_slab)

    mean = out_slab[:, 0:O]
    sigma = out_slab[:, O:2 * O]
    critic = out_slab[:, 2 * O:2 * O + 1]
    h_new = out_slab[:, 2 * O + 1:2 * O + 1 + H]
    c_new = out_slab[:, 2 * O + 1 + H:2 * O + 1 + 2 * H]
    return mean, sigma, critic, h_new, c_new


# ---------------------- host-side parameter packing --------------------------
def pack_params(p, D, H, O):
    """Pack all weights/biases into one sublane-aligned f32 slab (done ONCE).

    LayerNorm gamma/beta are folded into the l1 weight/bias; LSTM bih+bhh are
    folded into a single bias row; the three hidden-state heads are fused
    column-wise.
    """
    L = _slab_layout(D, H, O)
    H2 = 2 * H
    slab = jnp.zeros((L["rows"], L["cols"]), jnp.float32)

    # --- LayerNorm affine fold: (xn*g + b) @ W1 + b1 == xn @ (g·W1) + (b@W1 + b1)
    w1f = p["ln_g"].reshape(D, 1) * p["w1"]            # (D, H2)
    b1f = p["b1"] + p["ln_b"] @ p["w1"]                # (1, H2)

    slab = slab.at[L["r_w1"]:L["r_w1"] + D, 0:H2].set(w1f)
    slab = slab.at[L["r_w2"]:L["r_w2"] + H2, 0:H].set(p["w2"])
    slab = slab.at[L["r_wl"]:L["r_wl"] + 2 * H, 0:4 * H].set(
        jnp.concatenate([p["wih"], p["whh"]], axis=0))
    slab = slab.at[L["r_wh"]:L["r_wh"] + H, 0:2 * O + H].set(
        jnp.concatenate([p["wm"], p["ws"], p["wc1"]], axis=1))
    slab = slab.at[L["r_wc"]:L["r_wc"] + H, 0:1].set(p["wco"])
    rb = L["r_b"]
    slab = slab.at[rb + 0:rb + 1, 0:H2].set(b1f)
    slab = slab.at[rb + 1:rb + 2, 0:H].set(p["b2"])
    slab = slab.at[rb + 2:rb + 3, 0:4 * H].set(p["bih"] + p["bhh"])
    slab = slab.at[rb + 3:rb + 4, 0:2 * O + H].set(
        jnp.concatenate([p["bm"], p["bs"], p["bc1"]], axis=1))
    slab = slab.at[rb + 4:rb + 5, 0:1].set(p["bco"])
    return slab


# ------------------------- deterministic param init --------------------------
def init_params(key, input_size, hidden_size, output_size):
    f32 = jnp.float32

    def uniform(key, shape, bound):
        return jax.random.uniform(key, shape, f32, -bound, bound)

    def kaiming_bound(fan, a=0.25):
        gain = math.sqrt(2.0 / (1.0 + a * a))
        return gain * math.sqrt(3.0 / fan)

    def xavier_bound(fan_in, fan_out, gain=1.0):
        return gain * math.sqrt(6.0 / (fan_in + fan_out))

    def linear_bias_bound(fan_in):
        return 1.0 / math.sqrt(fan_in)

    ks = jax.random.split(key, 16)
    H, H2, D, O = hidden_size, hidden_size * 2, input_size, output_size

    params = {}
    # LayerNorm (PyTorch default init: ones / zeros); row vectors for broadcast.
    params["ln_g"] = jnp.ones((1, D), f32)
    params["ln_b"] = jnp.zeros((1, D), f32)
    # l1: kaiming_uniform fan_in
    params["w1"] = uniform(ks[0], (D, H2), kaiming_bound(D))
    params["b1"] = uniform(ks[1], (1, H2), linear_bias_bound(D))
    # l2: kaiming_uniform fan_out
    params["w2"] = uniform(ks[2], (H2, H), kaiming_bound(H))
    params["b2"] = uniform(ks[3], (1, H), linear_bias_bound(H2))
    # LSTMCell: default uniform(-1/sqrt(H), 1/sqrt(H)), gate order i,f,g,o
    lb = 1.0 / math.sqrt(H)
    params["wih"] = uniform(ks[4], (H, 4 * H), lb)
    params["whh"] = uniform(ks[5], (H, 4 * H), lb)
    params["bih"] = uniform(ks[6], (1, 4 * H), lb)
    params["bhh"] = uniform(ks[7], (1, 4 * H), lb)
    # act_mean / act_sigma: xavier_uniform, zero bias
    params["wm"] = uniform(ks[8], (H, O), xavier_bound(H, O))
    params["bm"] = jnp.zeros((1, O), f32)
    params["ws"] = uniform(ks[9], (H, O), xavier_bound(H, O))
    params["bs"] = jnp.zeros((1, O), f32)
    # cri_l1: kaiming_uniform fan_out
    params["wc1"] = uniform(ks[10], (H, H), kaiming_bound(H))
    params["bc1"] = uniform(ks[11], (1, H), linear_bias_bound(H))
    # cri_output: xavier_uniform, zero bias
    params["wco"] = uniform(ks[12], (H, 1), xavier_bound(H, 1))
    params["bco"] = jnp.zeros((1, 1), f32)
    return params


# ---------------------------- pure-JAX reference ------------------------------
def reference_forward(x, hx, cx, p):
    lrelu = lambda z: jnp.where(z >= 0, z, 0.25 * z)
    mu = jnp.mean(x, axis=-1, keepdims=True)
    var = jnp.mean((x - mu) ** 2, axis=-1, keepdims=True)
    xn = (x - mu) / jnp.sqrt(var + 1e-5) * p["ln_g"] + p["ln_b"]
    h1 = lrelu(xn @ p["w1"] + p["b1"])
    h2 = lrelu(h1 @ p["w2"] + p["b2"])
    gates = h2 @ p["wih"] + p["bih"] + hx @ p["whh"] + p["bhh"]
    H = hx.shape[-1]
    i_g = jax.nn.sigmoid(gates[:, :H])
    f_g = jax.nn.sigmoid(gates[:, H:2 * H])
    g_g = jnp.tanh(gates[:, 2 * H:3 * H])
    o_g = jax.nn.sigmoid(gates[:, 3 * H:])
    c_new = f_g * cx + i_g * g_g
    h_new = o_g * jnp.tanh(c_new)
    mean = 2.0 * jnp.tanh(h_new @ p["wm"] + p["bm"])
    sigma = jax.nn.softplus(h_new @ p["ws"] + p["bs"]) + 0.001
    c1 = lrelu(h_new @ p["wc1"] + p["bc1"])
    critic = c1 @ p["wco"] + p["bco"]
    return mean, sigma, critic, h_new, c_new


if __name__ == "__main__":
    B, D, H, O = 8, 16, 32, 4  # batch, input_size, hidden_size, output_size

    key = jax.random.PRNGKey(0)
    k_x, k_h, k_c, k_p = jax.random.split(key, 4)
    x = jax.random.normal(k_x, (B, D), jnp.float32)
    hx = jax.random.normal(k_h, (B, H), jnp.float32) * 0.1
    cx = jax.random.normal(k_c, (B, H), jnp.float32) * 0.1
    params = init_params(k_p, D, H, O)

    # Perturb the LayerNorm affine so the gamma/beta -> W1/b1 fold is actually
    # exercised (PyTorch default init is ones/zeros, which would hide a fold bug).
    kg, kb = jax.random.split(jax.random.PRNGKey(1))
    params["ln_g"] = 1.0 + 0.1 * jax.random.normal(kg, (1, D), jnp.float32)
    params["ln_b"] = 0.1 * jax.random.normal(kb, (1, D), jnp.float32)

    # Pack all parameters once into a single sublane-aligned slab.
    p_slab = pack_params(params, D, H, O)

    outs = actor_critic_forward(x, hx, cx, p_slab, D, H, O)
    outs = jax.block_until_ready(outs)

    refs = reference_forward(x, hx, cx, params)
    for o, r in zip(outs, refs):
        assert o.shape == r.shape and o.dtype == r.dtype
        assert jnp.allclose(o, r, atol=1e-4, rtol=1e-4), "mismatch vs reference"

    # TODO(synk): torch.distributions.Normal sampling (action()) and loss_func()
    # are training/host-side utilities and are intentionally not kernelized.
    print("KERNEL_OK")
</pallas_src>

<mosaic_0001>
module attributes {stable_mosaic.version = 11 : i64} {
  func.func @kernel(%arg0: memref<8x16xf32, #tpu.memory_space<vmem>>, %arg1: memref<8x32xf32, #tpu.memory_space<vmem>>, %arg2: memref<8x32xf32, #tpu.memory_space<vmem>>, %arg3: memref<216x128xf32, #tpu.memory_space<vmem>>, %arg4: memref<8x128xf32, #tpu.memory_space<vmem>>) attributes {dimension_semantics = [], scalar_prefetch = 0 : i64, scratch_operands = 0 : i64, tpu.core_type = #tpu.core_type<tc>} {
    %c0 = arith.constant 0 : index
    %c0_0 = arith.constant 0 : index
    %0 = vector.load %arg0[%c0, %c0_0] : memref<8x16xf32, #tpu.memory_space<vmem>>, vector<8x16xf32>
    %c0_1 = arith.constant 0 : index
    %c0_2 = arith.constant 0 : index
    %1 = vector.load %arg1[%c0_1, %c0_2] : memref<8x32xf32, #tpu.memory_space<vmem>>, vector<8x32xf32>
    %c0_3 = arith.constant 0 : index
    %c0_4 = arith.constant 0 : index
    %2 = vector.load %arg2[%c0_3, %c0_4] : memref<8x32xf32, #tpu.memory_space<vmem>>, vector<8x32xf32>
    %c0_5 = arith.constant 0 : index
    %c0_6 = arith.constant 0 : index
    %3 = vector.load %arg3[%c0_5, %c0_6] : memref<216x128xf32, #tpu.memory_space<vmem>>, vector<16x64xf32>
    %c16 = arith.constant 16 : index
    %c0_7 = arith.constant 0 : index
    %4 = vector.load %arg3[%c16, %c0_7] : memref<216x128xf32, #tpu.memory_space<vmem>>, vector<64x32xf32>
    %c80 = arith.constant 80 : index
    %c0_8 = arith.constant 0 : index
    %5 = vector.load %arg3[%c80, %c0_8] : memref<216x128xf32, #tpu.memory_space<vmem>>, vector<64x128xf32>
    %c144 = arith.constant 144 : index
    %c0_9 = arith.constant 0 : index
    %6 = vector.load %arg3[%c144, %c0_9] : memref<216x128xf32, #tpu.memory_space<vmem>>, vector<32x40xf32>
    %c176 = arith.constant 176 : index
    %c0_10 = arith.constant 0 : index
    %7 = vector.load %arg3[%c176, %c0_10] : memref<216x128xf32, #tpu.memory_space<vmem>>, vector<32x1xf32>
    %c208 = arith.constant 208 : index
    %c0_11 = arith.constant 0 : index
    %8 = vector.load %arg3[%c208, %c0_11] : memref<216x128xf32, #tpu.memory_space<vmem>>, vector<1x64xf32>
    %c209 = arith.constant 209 : index
    %c0_12 = arith.constant 0 : index
    %9 = vector.load %arg3[%c209, %c0_12] : memref<216x128xf32, #tpu.memory_space<vmem>>, vector<1x32xf32>
    %c210 = arith.constant 210 : index
    %c0_13 = arith.constant 0 : index
    %10 = vector.load %arg3[%c210, %c0_13] : memref<216x128xf32, #tpu.memory_space<vmem>>, vector<1x128xf32>
    %c211 = arith.constant 211 : index
    %c0_14 = arith.constant 0 : index
    %11 = vector.load %arg3[%c211, %c0_14] : memref<216x128xf32, #tpu.memory_space<vmem>>, vector<1x40xf32>
    %c212 = arith.constant 212 : index
    %c0_15 = arith.constant 0 : index
    %12 = vector.load %arg3[%c212, %c0_15] : memref<216x128xf32, #tpu.memory_space<vmem>>, vector<1x1xf32>
    %cst = arith.constant dense<0.000000e+00> : vector<8xf32>
    %13 = vector.multi_reduction <add>, %0, %cst [1] : vector<8x16xf32> to vector<8xf32>
    %14 = vector.shape_cast %13 : vector<8xf32> to vector<8x1xf32>
    %cst_16 = arith.constant 1.600000e+01 : f32
    %15 = vector.broadcast %cst_16 : f32 to vector<8x1xf32>
    %16 = arith.divf %14, %15 : vector<8x1xf32>
    %17 = vector.broadcast %16 : vector<8x1xf32> to vector<8x16xf32>
    %18 = arith.subf %0, %17 : vector<8x16xf32>
    %19 = arith.mulf %18, %18 : vector<8x16xf32>
    %cst_17 = arith.constant dense<0.000000e+00> : vector<8xf32>
    %20 = vector.multi_reduction <add>, %19, %cst_17 [1] : vector<8x16xf32> to vector<8xf32>
    %21 = vector.shape_cast %20 : vector<8xf32> to vector<8x1xf32>
    %cst_18 = arith.constant 1.600000e+01 : f32
    %22 = vector.broadcast %cst_18 : f32 to vector<8x1xf32>
    %23 = arith.divf %21, %22 : vector<8x1xf32>
    %24 = vector.broadcast %16 : vector<8x1xf32> to vector<8x16xf32>
    %25 = arith.subf %0, %24 : vector<8x16xf32>
    %cst_19 = arith.constant 9.99999974E-6 : f32
    %26 = vector.broadcast %cst_19 : f32 to vector<8x1xf32>
    %27 = arith.addf %23, %26 : vector<8x1xf32>
    %28 = math.rsqrt %27 : vector<8x1xf32>
    %29 = vector.broadcast %28 : vector<8x1xf32> to vector<8x16xf32>
    %30 = arith.mulf %25, %29 : vector<8x16xf32>
    %cst_20 = arith.constant dense<0.000000e+00> : vector<8x64xf32>
    %31 = tpu.matmul %30, %3, %cst_20 {dimension_numbers = #tpu.dot_dimension_numbers<[1], [0], [0], [1], [0, 0, 1, 1], [], []>} : vector<8x16xf32>, vector<16x64xf32>, vector<8x64xf32> -> vector<8x64xf32>
    %32 = vector.broadcast %8 : vector<1x64xf32> to vector<8x64xf32>
    %33 = arith.addf %31, %32 : vector<8x64xf32>
    %cst_21 = arith.constant 0.000000e+00 : f32
    %34 = vector.broadcast %cst_21 : f32 to vector<8x64xf32>
    %35 = arith.cmpf oge, %33, %34 : vector<8x64xf32>
    %cst_22 = arith.constant 2.500000e-01 : f32
    %36 = vector.broadcast %cst_22 : f32 to vector<8x64xf32>
    %37 = arith.mulf %36, %33 : vector<8x64xf32>
    %38 = arith.select %35, %33, %37 : vector<8x64xi1>, vector<8x64xf32>
    %cst_23 = arith.constant dense<0.000000e+00> : vector<8x32xf32>
    %39 = tpu.matmul %38, %4, %cst_23 {dimension_numbers = #tpu.dot_dimension_numbers<[1], [0], [0], [1], [0, 0, 1, 1], [], []>} : vector<8x64xf32>, vector<64x32xf32>, vector<8x32xf32> -> vector<8x32xf32>
    %40 = vector.broadcast %9 : vector<1x32xf32> to vector<8x32xf32>
    %41 = arith.addf %39, %40 : vector<8x32xf32>
    %cst_24 = arith.constant 0.000000e+00 : f32
    %42 = vector.broadcast %cst_24 : f32 to vector<8x32xf32>
    %43 = arith.cmpf oge, %41, %42 : vector<8x32xf32>
    %cst_25 = arith.constant 2.500000e-01 : f32
    %44 = vector.broadcast %cst_25 : f32 to vector<8x32xf32>
    %45 = arith.mulf %44, %41 : vector<8x32xf32>
    %46 = arith.select %43, %41, %45 : vector<8x32xi1>, vector<8x32xf32>
    %47 = tpu.concatenate %46, %1 in 1 : vector<8x32xf32>, vector<8x32xf32> -> vector<8x64xf32>
    %cst_26 = arith.constant dense<0.000000e+00> : vector<8x128xf32>
    %48 = tpu.matmul %47, %5, %cst_26 {dimension_numbers = #tpu.dot_dimension_numbers<[1], [0], [0], [1], [0, 0, 1, 1], [], []>} : vector<8x64xf32>, vector<64x128xf32>, vector<8x128xf32> -> vector<8x128xf32>
    %49 = vector.broadcast %10 : vector<1x128xf32> to vector<8x128xf32>
    %50 = arith.addf %48, %49 : vector<8x128xf32>
    %51 = arith.negf %50 : vector<8x128xf32>
    %52 = math.exp %51 : vector<8x128xf32>
    %cst_27 = arith.constant 1.000000e+00 : f32
    %53 = vector.broadcast %cst_27 : f32 to vector<8x128xf32>
    %54 = arith.addf %53, %52 : vector<8x128xf32>
    %55 = arith.divf %53, %54 : vector<8x128xf32>
    %56 = math.tanh %50 : vector<8x128xf32>
    %57 = vector.extract_strided_slice %55 {offsets = [0, 0], sizes = [8, 32], strides = [1, 1]} : vector<8x128xf32> to vector<8x32xf32>
    %58 = vector.extract_strided_slice %55 {offsets = [0, 32], sizes = [8, 32], strides = [1, 1]} : vector<8x128xf32> to vector<8x32xf32>
    %59 = vector.extract_strided_slice %56 {offsets = [0, 64], sizes = [8, 32], strides = [1, 1]} : vector<8x128xf32> to vector<8x32xf32>
    %60 = vector.extract_strided_slice %55 {offsets = [0, 96], sizes = [8, 32], strides = [1, 1]} : vector<8x128xf32> to vector<8x32xf32>
    %61 = arith.mulf %58, %2 : vector<8x32xf32>
    %62 = arith.mulf %57, %59 : vector<8x32xf32>
    %63 = arith.addf %61, %62 : vector<8x32xf32>
    %64 = math.tanh %63 : vector<8x32xf32>
    %65 = arith.mulf %60, %64 : vector<8x32xf32>
    %cst_28 = arith.constant dense<0.000000e+00> : vector<8x40xf32>
    %66 = tpu.matmul %65, %6, %cst_28 {dimension_numbers = #tpu.dot_dimension_numbers<[1], [0], [0], [1], [0, 0, 1, 1], [], []>} : vector<8x32xf32>, vector<32x40xf32>, vector<8x40xf32> -> vector<8x40xf32>
    %67 = vector.broadcast %11 : vector<1x40xf32> to vector<8x40xf32>
    %68 = arith.addf %66, %67 : vector<8x40xf32>
    %69 = vector.extract_strided_slice %68 {offsets = [0, 0], sizes = [8, 4], strides = [1, 1]} : vector<8x40xf32> to vector<8x4xf32>
    %70 = math.tanh %69 : vector<8x4xf32>
    %cst_29 = arith.constant 2.000000e+00 : f32
    %71 = vector.broadcast %cst_29 : f32 to vector<8x4xf32>
    %72 = arith.mulf %71, %70 : vector<8x4xf32>
    %73 = vector.extract_strided_slice %68 {offsets = [0, 4], sizes = [8, 4], strides = [1, 1]} : vector<8x40xf32> to vector<8x4xf32>
    %cst_30 = arith.constant 0.000000e+00 : f32
    %74 = vector.broadcast %cst_30 : f32 to vector<8x4xf32>
    %75 = arith.maximumf %73, %74 : vector<8x4xf32>
    %76 = vector.broadcast %cst_30 : f32 to vector<8x4xf32>
    %77 = arith.subf %73, %76 : vector<8x4xf32>
    %78 = arith.cmpf one, %77, %77 : vector<8x4xf32>
    %79 = vector.broadcast %cst_30 : f32 to vector<8x4xf32>
    %80 = arith.addf %73, %79 : vector<8x4xf32>
    %81 = math.absf %77 : vector<8x4xf32>
    %cst_31 = arith.constant 0.000000e+00 : f32
    %82 = vector.broadcast %cst_31 : f32 to vector<8x4xf32>
    %83 = arith.subf %82, %81 : vector<8x4xf32>
    %84 = math.exp %83 : vector<8x4xf32>
    %85 = math.log1p %84 : vector<8x4xf32>
    %86 = arith.addf %75, %85 : vector<8x4xf32>
    %87 = arith.select %78, %80, %86 : vector<8x4xi1>, vector<8x4xf32>
    %cst_32 = arith.constant 1.000000e-03 : f32
    %88 = vector.broadcast %cst_32 : f32 to vector<8x4xf32>
    %89 = arith.addf %87, %88 : vector<8x4xf32>
    %90 = vector.extract_strided_slice %68 {offsets = [0, 8], sizes = [8, 32], strides = [1, 1]} : vector<8x40xf32> to vector<8x32xf32>
    %cst_33 = arith.constant 0.000000e+00 : f32
    %91 = vector.broadcast %cst_33 : f32 to vector<8x32xf32>
    %92 = arith.cmpf oge, %90, %91 : vector<8x32xf32>
    %cst_34 = arith.constant 2.500000e-01 : f32
    %93 = vector.broadcast %cst_34 : f32 to vector<8x32xf32>
    %94 = arith.mulf %93, %90 : vector<8x32xf32>
    %95 = arith.select %92, %90, %94 : vector<8x32xi1>, vector<8x32xf32>
    %cst_35 = arith.constant dense<0.000000e+00> : vector<8x1xf32>
    %96 = tpu.matmul %95, %7, %cst_35 {dimension_numbers = #tpu.dot_dimension_numbers<[1], [0], [0], [1], [0, 0, 1, 1], [], []>} : vector<8x32xf32>, vector<32x1xf32>, vector<8x1xf32> -> vector<8x1xf32>
    %97 = vector.broadcast %12 : vector<1x1xf32> to vector<8x1xf32>
    %98 = arith.addf %96, %97 : vector<8x1xf32>
    %cst_36 = arith.constant 0.000000e+00 : f32
    %99 = vector.broadcast %cst_36 : f32 to vector<8x55xf32>
    %100 = tpu.concatenate %72, %89, %98, %65, %63, %99 in 1 : vector<8x4xf32>, vector<8x4xf32>, vector<8x1xf32>, vector<8x32xf32>, vector<8x32xf32>, vector<8x55xf32> -> vector<8x128xf32>
    %c0_37 = arith.constant 0 : index
    %c0_38 = arith.constant 0 : index
    %101 = vector.load %arg4[%c0_37, %c0_38] : memref<8x128xf32, #tpu.memory_space<vmem>>, vector<8x128xf32>
    tpu.vector_store %arg4[%c0_37, %c0_38], %100 {strides = array<i32>} : memref<8x128xf32, #tpu.memory_space<vmem>>, vector<8x128xf32>,
    return
  }
}

</mosaic_0001>

<bundles_post_ra>
// kernel: tpu_custom_call.1
= control target key start
LH: loop header
LB: loop body
LE: loop exit
PB: predicated region body
PF: predicated region fallthrough
CT: control target
= control target key end

     0   :  { %9 = vsyncpa [#allocation3], 0  ;;  %s1050_s0 = inlined_call_operand.hbm [shape: f32[8,16], index: 0, kind: input, shape index: {}]   ;;  %s1051_s1 = inlined_call_operand.hbm [shape: f32[8,32], index: 1, kind: input, shape index: {}]   ;;  %s1052_s2 = inlined_call_operand.hbm [shape: f32[8,32], index: 2, kind: input, shape index: {}]   ;;  %s1053_s3 = inlined_call_operand.hbm [shape: f32[216,128], index: 3, kind: input, shape index: {}]   ;;  %s1054_s4 = inlined_call_operand.hbm [shape: f32[8,128], index: 4, kind: output, shape index: {}]  }
   0x1   :  { %10 = vsyncpa [#allocation6], 0 }
   0x2   :  { %11 = vsyncpa [#allocation9], 0 }
   0x3   :  { %12 = vsyncpa [#allocation4], 0  ;;  %s906_s15 = smov [#allocation5]   ;;  %s907_s17 = smov [#allocation2]  }
   0x4   :  { %s29_s16 = sshll.u32 %s906_s15, 4  ;;  %s19_s18 = sshll.u32 %s907_s17, 4  ;;  %s30_s16 = int_to_ptr.vmem [resolvable:$true] %s29_s16  ;;  %s20_s18 = int_to_ptr.vmem [resolvable:$true] %s19_s18 }
   0x5   :  { %s788_s21 = scalar_lea.hbm %s1051_s1, 128 }
   0x6   :  { %p789_p0 = scmp.ne.s32.totalorder %s1051_s1, %s788_s21  ;;  %p792_p1 = scmp.lt.u32.totalorder %s788_s21, %s1051_s1 }
   0x8   :  { %p794_p2 = pnand %p792_p1, %p789_p0 }
   0xa   :  { %797 = shalt.err (!%p794_p2)
}
   0xb   :  { %s798_s26 = scalar_lea.vmem %s30_s16, 128  ;;  %p803_p4 = scmp.lt.s32.totalorder %s30_s16, %s30_s16 }
   0xc   :  { %p799_p3 = scmp.ne.s32.totalorder %s30_s16, %s798_s26  ;;  %p804_p5 = scmp.lt.s32.totalorder %s798_s26, %s798_s26 }
   0xe   :  { %p805_p6 = por %p804_p5, %p803_p4 }
  0x10   :  { %p806_p7 = pnand %p805_p6, %p799_p3 }
  0x12   :  { %809 = shalt.err (!%p806_p7)
}
  0x13   :  { %32 = dma.hbm_to_vmem [thread:$0]  %s1051_s1, 128, %s30_s16, [#allocation6]  }
  0x14   :  { %s810_s5 = scalar_lea.hbm %s1050_s0, 128 }
  0x15   :  { %p811_p8 = scmp.ne.s32.totalorder %s1050_s0, %s810_s5  ;;  %p814_p9 = scmp.lt.u32.totalorder %s810_s5, %s1050_s0 }
  0x17   :  { %p816_p10 = pnand %p814_p9, %p811_p8 }
  0x19   :  { %819 = shalt.err (!%p816_p10)
}
  0x1a   :  { %s820_s10 = scalar_lea.vmem %s20_s18, 128  ;;  %p825_p12 = scmp.lt.s32.totalorder %s20_s18, %s20_s18 }
  0x1b   :  { %p821_p11 = scmp.ne.s32.totalorder %s20_s18, %s820_s10  ;;  %p826_p13 = scmp.lt.s32.totalorder %s820_s10, %s820_s10 }
  0x1d   :  { %p827_p0 = por %p826_p13, %p825_p12 }
  0x1f   :  { %p828_p1 = pnand %p827_p0, %p821_p11 }
  0x21   :  { %831 = shalt.err (!%p828_p1)
}
  0x22   :  { %22 = dma.hbm_to_vmem [thread:$0]  %s1050_s0, 128, %s20_s18, [#allocation3]  }
  0x23   :  { %s908_s12 = smov [#allocation7]   ;;  %s909_s14 = smov [#allocation8]  }
  0x24   :  { %s39_s13 = sshll.u32 %s908_s12, 4  ;;  %s48_s15 = sshll.u32 %s909_s14, 4  ;;  %s40_s13 = int_to_ptr.vmem [resolvable:$true] %s39_s13  ;;  %s970_s15 = int_to_ptr.vmem [resolvable:$true] %s48_s15 }
  0x25   :  { %s832_s19 = scalar_lea.hbm %s1052_s2, 128 }
  0x26   :  { %p833_p2 = scmp.ne.s32.totalorder %s1052_s2, %s832_s19  ;;  %p836_p3 = scmp.lt.u32.totalorder %s832_s19, %s1052_s2 }
  0x28   :  { %p838_p4 = pnand %p836_p3, %p833_p2 }
  0x2a   :  { %841 = shalt.err (!%p838_p4)
}
  0x2b   :  { %s842_s0 = scalar_lea.vmem %s40_s13, 128  ;;  %p847_p6 = scmp.lt.s32.totalorder %s40_s13, %s40_s13 }
  0x2c   :  { %p843_p5 = scmp.ne.s32.totalorder %s40_s13, %s842_s0  ;;  %p848_p7 = scmp.lt.s32.totalorder %s842_s0, %s842_s0 }
  0x2e   :  { %p849_p8 = por %p848_p7, %p847_p6 }
  0x30   :  { %p850_p9 = pnand %p849_p8, %p843_p5 }
  0x32   :  { %853 = shalt.err (!%p850_p9)
}
  0x33   :  { %42 = dma.hbm_to_vmem [thread:$0]  %s1052_s2, 128, %s40_s13, [#allocation6]  }
  0x34   :  { %s854_s27 = scalar_lea.hbm %s1053_s3, 3456 }
  0x35   :  { %p855_p10 = scmp.ne.s32.totalorder %s1053_s3, %s854_s27  ;;  %p858_p11 = scmp.lt.u32.totalorder %s854_s27, %s1053_s3 }
  0x37   :  { %p860_p12 = pnand %p858_p11, %p855_p10 }
  0x39   :  { %863 = shalt.err (!%p860_p12)
}
  0x3a   :  { %s864_s6 = scalar_lea.vmem %s970_s15, 3456  ;;  %p869_p0 = scmp.lt.s32.totalorder %s970_s15, %s970_s15 }
  0x3b   :  { %p865_p13 = scmp.ne.s32.totalorder %s970_s15, %s864_s6  ;;  %p870_p1 = scmp.lt.s32.totalorder %s864_s6, %s864_s6 }
  0x3d   :  { %p871_p2 = por %p870_p1, %p869_p0 }
  0x3f   :  { %p872_p3 = pnand %p871_p2, %p865_p13 }
  0x41   :  { %875 = shalt.err (!%p872_p3)
}
  0x42   :  { %s910_s2 = smov 128   ;;  %s911_s7 = smov 8  }
  0x43   :  { %54 = dma.hbm_to_vmem [thread:$0]  %s1053_s3, 3456, %s970_s15, [#allocation9], %s910_s2, %s910_s2, %s911_s7  }
  0x44   :  { %898 = dma.done.wait [#allocation3], 128  }
  0x45   :  { %899 = vsyncadd [#allocation3], 4294967168 }
  0x46   :  { %900 = dma.done.wait [#allocation6], 256  }
  0x47   :  { %901 = vsyncadd [#allocation6], 4294967040 }
  0x48   :  { %902 = dma.done.wait [#allocation9], 3456  }
  0x49   :  { %903 = vsyncadd [#allocation9], 4294963840  ;;  %vm101_vm0 = vcmask 130048   ;;  %v67_v0 = vld [vmem:[#allocation2] sm:$0xff]  ;;  %v70_v7 = vld [vmem:[#allocation8] sm:$0xff]  ;;  %v912_v9 = vmov 0.0|0.0  }
  0x4a   :  { %v102_v1 = vsel %vm101_vm0, %v67_v0, 0.0  ;;  %v71_v8 = vld [vmem:[#allocation8 + $0x8] sm:$0xff]  ;;  %718 = vmatprep.subr.bf16.mxu0 %v912_v9  ;;  %vm913_vm1 = vmmov 0   ;;  %v914_v11 = vmov 0.0   ;;  %721 = vmatprep.subr.bf16.mxu1 %v912_v9  ;;  %v72_v12 = vld [vmem:[#allocation8 + $0x10] sm:$0xff]  ;;  %v73_v13 = vld [vmem:[#allocation8 + $0x18] sm:$0xff] }
  0x4b   :  { %103 = vadd.xlane.f32.xlu0 %v102_v1  ;;  %v719_v10 = vpack.c.bf16 %v71_v8, %v70_v7  ;;  %655 = vmatprep.mubr.msk.f32.mxu0 %vm913_vm1, %v914_v11  ;;  %v74_v14 = vld [vmem:[#allocation8 + $0x20] sm:$0xff]  ;;  %v722_v15 = vpack.c.bf16 %v73_v13, %v72_v12  ;;  %v75_v16 = vld [vmem:[#allocation8 + $0x28] sm:$0xff]  ;;  %v76_v18 = vld [vmem:[#allocation8 + $0x30] sm:$0xff]  ;;  %s915_s3 = smov 32   ;;  %vm200_vm3 = vcmask 523264   ;;  %vm281_vm5 = vcmask 261120  }
  0x4c   :  { %674 = vmatprep.mubr.msk.f32.mxu1 %vm913_vm1, %v914_v11  ;;  %v725_v17 = vpack.c.bf16 %v75_v16, %v74_v14  ;;  %v77_v19 = vld [vmem:[#allocation8 + $0x38] sm:$0xff]  ;;  %v78_v26 = vld [vmem:[#allocation8 + $0x40] sm:$0xff]  ;;  %v79_v27 = vld [vmem:[#allocation8 + $0x48] sm:$0xff]  ;;  %s916_s10 = smov 64   ;;  %s917_s1 = smov 9   ;;  %vm581_vm9 = vcmask 31744  }
  0x4d   :  { %720 = vmatpush3.bf16.msra.mxu0 %v719_v10  ;;  %723 = vmatpush3.bf16.msra.mxu1 %v722_v15  ;;  %v728_v20 = vpack.c.bf16 %v77_v19, %v76_v18  ;;  %v731_v28 = vpack.c.bf16 %v79_v27, %v78_v26  ;;  %v68_v29 = vld [vmem:[#allocation5] sm:$0xff]  ;;  %v81_v31 = vld [vmem:[#allocation8 + $0x58] sm:$0xff]  ;;  %v82_v33 = vld [vmem:[#allocation8 + $0x60] sm:$0xff]  ;;  %s918_s11 = smov 120   ;;  %s919_s12 = smov 41   ;;  %vm583_vm10 = vcmask 64512  }
  0x4e   :  { %733 = vmatprep.subr.bf16.mxu0 %v912_v9  ;;  %724 = vmatprep.subr.bf16.mxu1 %v912_v9  ;;  %v80_v30 = vld [vmem:[#allocation8 + $0x50] sm:$0xff]  ;;  %v83_v34 = vld [vmem:[#allocation8 + $0x68] sm:$0xff]  ;;  %v85_v43 = vld [vmem:[#allocation8 + $0x78] sm:$0xff]  ;;  %vm585_vm11 = vcmask 72704   ;;  %vm587_vm12 = vcmask 334848   ;;  %s920_s13 = smov [#allocation10]  }
  0x4f   :  { %278 = vrot.lane.b32.xlu1 %v68_v29, %s915_s3  ;;  %v734_v32 = vpack.c.bf16 %v81_v31, %v80_v30  ;;  %v737_v35 = vpack.c.bf16 %v83_v34, %v82_v33  ;;  %v609_v36 = vld [vmem:[#allocation8 + $0xd0] ss:$0 sm:$0xff]  ;;  %v86_v45 = vld [vmem:[#allocation8 + $0x80] sm:$0xff]  ;;  %v87_v46 = vld [vmem:[#allocation8 + $0x88] sm:$0xff]  ;;  %s598_s14 = sshll.u32 %s920_s13, 4  ;;  %vm589_vm13 = vcmask 596992   ;;  %s599_s14 = int_to_ptr.vmem [resolvable:$true] %s598_s14 }
  0x50   :  { %v84_v42 = vld [vmem:[#allocation8 + $0x70] sm:$0xff]  ;;  %v743_v47 = vpack.c.bf16 %v87_v46, %v86_v45  ;;  %v69_v48 = vld [vmem:[#allocation7] sm:$0xff]  ;;  %v91_v13 = vld [vmem:[#allocation8 + $0xa8] sm:$0xff]  ;;  %s876_s15 = scalar_lea.vmem %s599_s14, 128  ;;  %p881_p5 = scmp.lt.s32.totalorder %s599_s14, %s599_s14 }
  0x51   :  { %726 = vmatpush3.bf16.msra.mxu1 %v725_v17  ;;  %v740_v44 = vpack.c.bf16 %v85_v43, %v84_v42  ;;  %v611_v49 = vld [vmem:[#allocation8 + $0xd1] ss:$0 sm:$0xff]  ;;  %v613_v57 = vld [vmem:[#allocation8 + $0xd2] ss:$0 sm:$0xff]  ;;  %v89_v10 = vld [vmem:[#allocation8 + $0x98] sm:$0xff]  ;;  %p877_p4 = scmp.ne.s32.totalorder %s599_s14, %s876_s15  ;;  %p882_p6 = scmp.lt.s32.totalorder %s876_s15, %s876_s15 }
  0x52   :  { %727 = vmatprep.subr.bf16.mxu1 %v912_v9  ;;  %v88_v8 = vld [vmem:[#allocation8 + $0x90] sm:$0xff] }
  0x53   :  { %v746_v12 = vpack.c.bf16 %v89_v10, %v88_v8  ;;  %v92_v19 = vld [vmem:[#allocation8 + $0xb0] sm:$0xff]  ;;  %p883_p7 = por %p882_p6, %p881_p5 }
  0x55   :  { %729 = vmatpush3.bf16.msra.mxu1 %v728_v20  ;;  %v93_v20 = vld [vmem:[#allocation8 + $0xb8] sm:$0xff]  ;;  %p884_p8 = pnand %p883_p7, %p877_p4 }
  0x56   :  { %730 = vmatprep.subr.bf16.mxu1 %v912_v9 }
  0x59   :  { %732 = vmatpush3.bf16.msra.mxu1 %v731_v28 }
  0x5a   :  { %745 = vmatprep.subr.bf16.mxu1 %v912_v9 }
  0xc1   :  { %v279_v54 = vpop.permute.xlu1 %278 }
  0xd8   :  { %v104_v2 = vpop.xlane.xlu0 %103 }
  0xd9   :  { %v106_v3 = vmul.f32 0.0625, %v104_v2 }
  0xdb   :  { %v107_v4 = vsub.f32 %v67_v0, %v106_v3 }
  0xdd   :  { %v108_v5 = vmul.f32 %v107_v4, %v107_v4 }
  0xdf   :  { %v109_v6 = vsel %vm101_vm0, %v108_v5, 0.0 }
  0xe0   :  { %110 = vadd.xlane.f32.xlu0 %v109_v6 }
  0xf6   :  { %368 = vrot.lane.b32.xlu0 %v69_v48, %s915_s3 }
 0x16d   :  { %v111_v21 = vpop.xlane.xlu0 %110 }
 0x16e   :  { %v112_v22 = vmul.f32 0.0625, %v111_v21  ;;  %v94_v21 = vld [vmem:[#allocation8 + $0xc0] sm:$0xff] }
 0x170   :  { %v113_v23 = vadd.f32 1e-05, %v112_v22  ;;  %v752_v22 = vpack.c.bf16 %v93_v20, %v92_v19 }
 0x172   :  { %772 = vrsqrt.f32 %v113_v23  ;;  %v95_v23 = vld [vmem:[#allocation8 + $0xc8] sm:$0xff] }
 0x17c   :  { %v773_v24 = vpop.eup %772 }
 0x17d   :  { %v115_v25 = vmul.f32 %v773_v24, %v107_v4  ;;  %v369_v4 = vpop.permute.xlu0 %368  ;;  %v755_v24 = vpack.c.bf16 %v95_v23, %v94_v21 }
 0x17f   :  { %656 = vmatmul.mubr.msk.f32.vlgmr.msra.gmra.mrb[0].mxu0 %vm101_vm0, %v115_v25  ;;  %v616_v25 = vld [vmem:[#allocation8 + $0xd3] ss:$0 sm:$0xff] }
 0x180   :  { %693 = vmatprep.mubr.msk.f32.mxu0 %vm913_vm1, %v914_v11  ;;  %735 = vmatpush3.bf16.msra.mxu0 %v734_v32  ;;  %v618_v32 = vld [vmem:[#allocation8 + $0xd4] ss:$0 sm:$0xff] }
 0x181   :  { %736 = vmatprep.subr.bf16.mxu0 %v912_v9 }
 0x184   :  { %738 = vmatpush3.bf16.msra.mxu0 %v737_v35 }
 0x185   :  { %739 = vmatprep.subr.bf16.mxu0 %v912_v9 }
 0x188   :  { %741 = vmatpush3.bf16.msra.mxu0 %v740_v44 }
 0x189   :  { %742 = vmatprep.subr.bf16.mxu0 %v912_v9 }
 0x18c   :  { %744 = vmatpush3.bf16.msra.mxu0 %v743_v47 }
 0x18d   :  { %751 = vmatprep.subr.bf16.mxu0 %v912_v9 }
 0x252   :  { %v189_v37 = vpop.f32.mrb[0].mxu0 }
 0x253   :  { %v190_v38 = vadd.f32 %v609_v36, %v189_v37  ;;  %v657_v39 = vpop.f32.mrb[1].mxu0 }
 0x255   :  { %vm193_vm2 = vcmp.ge.f32.partialorder %v190_v38, 0.0  ;;  %v194_v40 = vmul.f32 0.25, %v190_v38 }
 0x257   :  { %v195_v41 = vsel %vm193_vm2, %v190_v38, %v194_v40 }
 0x258   :  { %675 = vmatmul.mubr.msk.f32.vlgmr.msra.gmra.mrb[0].mxu1 %vm200_vm3, %v195_v41 }
 0x259   :  { %704 = vmatprep.mubr.msk.f32.mxu1 %vm913_vm1, %v914_v11  ;;  %747 = vmatpush3.bf16.msra.mxu1 %v746_v12 }
 0x25a   :  { %748 = vmatprep.subr.bf16.mxu1 %v912_v9 }
 0x32b   :  { %v270_v50 = vpop.f32.mrb[0].mxu1 }
 0x32c   :  { %v271_v51 = vadd.f32 %v611_v49, %v270_v50  ;;  %v676_v52 = vpop.f32.mrb[1].mxu1 }
 0x32e   :  { %vm274_vm4 = vcmp.ge.f32.partialorder %v271_v51, 0.0  ;;  %v275_v53 = vmul.f32 0.25, %v271_v51 }
 0x330   :  { %v276_v55 = vsel %vm274_vm4, %v271_v51, %v275_v53 }
 0x331   :  { %v282_v56 = vsel %vm281_vm5, %v276_v55, %v279_v54 }
 0x332   :  { %694 = vmatmul.mubr.msk.f32.vlgmr.msra.gmra.mrb[2].mxu0 %vm200_vm3, %v282_v56 }
 0x333   :  { %715 = vmatprep.mubr.msk.f32.mxu0 %vm913_vm1, %v914_v11  ;;  %v90_v11 = vld [vmem:[#allocation8 + $0xa0] sm:$0xff]  ;;  %753 = vmatpush3.bf16.msra.mxu0 %v752_v22 }
 0x334   :  { %v749_v14 = vpack.c.bf16 %v91_v13, %v90_v11  ;;  %754 = vmatprep.subr.bf16.mxu0 %v912_v9 }
 0x336   :  { %750 = vmatpush3.bf16.msra.mxu1 %v749_v14 }
 0x337   :  { %756 = vmatpush3.bf16.msra.mxu0 %v755_v24 }
 0x405   :  { %v356_v58 = vpop.f32.mrb[2].mxu0 }
 0x406   :  { %v357_v59 = vadd.f32 %v613_v57, %v356_v58  ;;  %v695_v60 = vpop.f32.mrb[3].mxu0 }
 0x408   :  { %774 = vtanh.f32 %v357_v59  ;;  %v615_v62 = vmul.f32 -1.442695, %v357_v59 }
 0x40a   :  { %776 = vpow2.f32 %v615_v62 }
 0x412   :  { %v775_v61 = vpop.eup %774 }
 0x413   :  { %373 = vrot.lane.b32.xlu1 %v775_v61, %s916_s10 }
 0x414   :  { %v777_v63 = vpop.eup %776 }
 0x415   :  { %v363_v0 = vadd.f32 1.0, %v777_v63 }
 0x417   :  { %778 = vrcp.f32 %v363_v0 }
 0x421   :  { %v779_v1 = vpop.eup %778 }
 0x422   :  { %v371_v5 = vmul.f32 %v779_v1, %v369_v4 }
 0x485   :  { %v374_v2 = vpop.permute.xlu1 %373 }
 0x486   :  { %v376_v3 = vmul.f32 %v779_v1, %v374_v2 }
 0x488   :  { %378 = vrot.lane.b32.xlu1 %v376_v3, %s915_s3 }
 0x4fa   :  { %v379_v6 = vpop.permute.xlu1 %378 }
 0x4fb   :  { %v381_v7 = vadd.f32 %v379_v6, %v371_v5 }
 0x4fd   :  { %780 = vtanh.f32 %v381_v7  ;;  %578 = vrot.lane.b32.xlu0 %v381_v7, %s917_s1 }
 0x507   :  { %v781_v15 = vpop.eup %780 }
 0x508   :  { %384 = vrot.lane.b32.xlu1 %v781_v15, %s916_s10 }
 0x56f   :  { %v579_v57 = vpop.permute.xlu0 %578 }
 0x57a   :  { %v385_v16 = vpop.permute.xlu1 %384 }
 0x57b   :  { %v387_v17 = vmul.f32 %v779_v1, %v385_v16 }
 0x57d   :  { %393 = vrot.lane.b32.xlu1 %v387_v17, %s915_s3 }
 0x5ef   :  { %v394_v18 = vpop.permute.xlu1 %393 }
 0x5f0   :  { %705 = vmatmul.mubr.msk.f32.vlgmr.msra.gmra.mrb[2].mxu1 %vm281_vm5, %v394_v18 }
 0x6c3   :  { %v463_v26 = vpop.f32.mrb[2].mxu1 }
 0x6c4   :  { %v464_v27 = vadd.f32 %v616_v25, %v463_v26  ;;  %v706_v28 = vpop.f32.mrb[3].mxu1 }
 0x6c6   :  { %vm488_vm6 = vcmp.ge.f32.partialorder %v464_v27, 0.0  ;;  %v489_v29 = vmul.f32 0.25, %v464_v27  ;;  %v472_v9 = vand.u32 2147483647, %v464_v27  ;;  %v469_v47 = vmax.f32 %v464_v27, 0.0 }
 0x6c7   :  { %vm470_vm8 = vcmp.ne.f32.partialorder %v464_v27, %v464_v27 }
 0x6c8   :  { %v490_v30 = vsel %vm488_vm6, %v464_v27, %v489_v29  ;;  %v473_v36 = vsub.f32 0.0, %v472_v9 }
 0x6c9   :  { %496 = vrot.lane.b32.xlu1 %v490_v30, %s918_s11 }
 0x6ca   :  { %v474_v37 = vmul.f32 1.442695, %v473_v36 }
 0x6cc   :  { %782 = vpow2.f32 %v474_v37 }
 0x6d6   :  { %v783_v38 = vpop.eup %782 }
 0x6d7   :  { %v476_v39 = vadd.f32 1.0, %v783_v38  ;;  %v479_v40 = vmul.f32 -0.5, %v783_v38  ;;  %v482_v43 = vand.u32 2147483647, %v783_v38 }
 0x6d9   :  { %784 = vlog2.f32 %v476_v39  ;;  %v480_v42 = vadd.f32 1.0, %v479_v40  ;;  %vm483_vm7 = vcmp.lt.f32.partialorder %v482_v43, 0.0004427343 }
 0x6da   :  { %786 = vtanh.f32 %v464_v27 }
 0x6db   :  { %v481_v45 = vmul.f32 %v783_v38, %v480_v42 }
 0x6e3   :  { %v785_v41 = vpop.eup %784 }
 0x6e4   :  { %v478_v44 = vmul.f32 0.6931472, %v785_v41  ;;  %v787_v50 = vpop.eup %786 }
 0x6e5   :  { %v468_v53 = vmul.f32 2.0, %v787_v50 }
 0x6e6   :  { %v484_v46 = vsel %vm483_vm7, %v481_v45, %v478_v44 }
 0x6e7   :  { %v485_v48 = vadd.f32 %v484_v46, %v469_v47 }
 0x6e9   :  { %v486_v49 = vsel %vm470_vm8, %v464_v27, %v485_v48 }
 0x6ea   :  { %v487_v51 = vadd.f32 0.001, %v486_v49 }
 0x6ec   :  { %v582_v54 = vsel %vm581_vm9, %v468_v53, %v487_v51 }
 0x73b   :  { %v497_v31 = vpop.permute.xlu1 %496 }
 0x73c   :  { %716 = vmatmul.mubr.msk.f32.vlgmr.msra.gmra.mrb[4].mxu0 %vm281_vm5, %v497_v31 }
 0x80f   :  { %v566_v33 = vpop.f32.mrb[4].mxu0 }
 0x810   :  { %v567_v34 = vadd.f32 %v618_v32, %v566_v33  ;;  %v717_v35 = vpop.f32.mrb[5].mxu0 }
 0x812   :  { %571 = vrot.lane.b32.xlu1 %v567_v34, %s911_s7 }
 0x816   :  { %574 = vrot.lane.b32.xlu1 %v387_v17, %s919_s12 }
 0x884   :  { %v572_v52 = vpop.permute.xlu1 %571 }
 0x885   :  { %v584_v55 = vsel %vm583_vm10, %v582_v54, %v572_v52 }
 0x888   :  { %v575_v56 = vpop.permute.xlu1 %574 }
 0x889   :  { %v586_v58 = vsel %vm585_vm11, %v584_v55, %v575_v56 }
 0x88a   :  { %v588_v59 = vsel %vm587_vm12, %v586_v58, %v579_v57 }
 0x88b   :  { %v590_v60 = vsel %vm589_vm13, %v588_v59, 0.0 }
 0x88c   :  { %591 = vst [vmem:[#allocation10] sm:$0xff] %v590_v60 }
 0x88d   :  { %887 = shalt.err (!%p884_p8)
}
 0x88e   :  { %s888_s19 = scalar_lea.hbm %s1054_s4, 128 }
 0x88f   :  { %p889_p9 = scmp.ne.s32.totalorder %s1054_s4, %s888_s19  ;;  %p892_p10 = scmp.lt.u32.totalorder %s888_s19, %s1054_s4 }
 0x891   :  { %p894_p11 = pnand %p892_p10, %p889_p9 }
 0x893   :  { %897 = shalt.err (!%p894_p11)
}
 0x894   :  { %601 = dma.vmem_to_hbm [thread:$0]  %s599_s14, 128, %s1054_s4, [#allocation4]  }
 0x895   :  { %904 = dma.done.wait [#allocation4], 128  }
 0x896   :  { %905 = vsyncadd [#allocation4], 4294967168 }
 0x897   :  { %605 = vsyncpa [#allocation3], 1 }
 0x898   :  { %606 = vsyncpa [#allocation6], 1 }
 0x899   :  { %607 = vsyncpa [#allocation9], 1 }
 0x89a   :  { %608 = vsyncpa [#allocation4], 1 }

</bundles_post_ra>
